<compile_context>
chip_gen: v7x
topology: tpu7x:2x2x1
jax: 0.10.0
libtpu: 0.0.40
codegen_flags: <defaults>
</compile_context>

<pallas_src>
import jax
import jax.numpy as jnp
from jax import lax
from jax.experimental import pallas as pl
from jax.experimental.pallas import tpu as pltpu


def _identity_kernel(x_ref, o_ref):
    # Straight VMEM tile copy.
    o_ref[...] = x_ref[...]


def _chip_tuning():
    """(target_block_bytes, vmem_limit_bytes) per TPU generation."""
    try:
        kind = jax.devices()[0].device_kind.lower()
    except Exception:
        kind = ""
    if "7" in kind:  # v7x: 3.2 TB/s HBM, 64 MiB VMEM -> bigger blocks, higher limit
        return 8 * 1024 * 1024, 40 << 20
    # v5e / v6e (and unknown): 4 MiB blocks, explicit 32 MiB scoped VMEM
    return 4 * 1024 * 1024, 32 << 20


def _plan_view(total, itemsize):
    """Pick a lane-dense 2-D view: mode in {'elem','byte','pad'}, lane width W (W % 128 == 0)."""
    for w in (1024, 512, 256, 128):
        if total % w == 0:
            return "elem", w
    total_bytes = total * itemsize
    for w in (1024, 512, 256, 128):
        if total_bytes % w == 0:
            return "byte", w
    return "pad", 1024


def _copy_2d(x2, *, target_block_bytes, vmem_limit_bytes, donate):
    """Tiled lane-dense copy of a (N, W) array, W a multiple of 128."""
    N, W = x2.shape
    itemsize = jnp.dtype(x2.dtype).itemsize
    row_bytes = W * itemsize
    total_bytes = N * row_bytes

    tc = W  # always a multiple of 128 (<=1024) -> full, unmasked lane-dense stores

    # Row tile: ~target_block_bytes per block, 32-row aligned (covers bf16/int8 packing).
    tr = max(32, (target_block_bytes // row_bytes) // 32 * 32)
    if tr >= N:
        if total_bytes > (2 << 20) and N >= 64:
            # Keep >= 2 row blocks so both v7x TensorCores get DMA work.
            tr = max(32, (N // 2) // 32 * 32)
        else:
            tr = N  # full extent: always a legal block dim
    grid = (pl.cdiv(N, tr),)

    extra = {}
    if donate:
        # Only alias when the caller actually donates x; otherwise XLA would
        # insert a defensive full copy of the live input before the kernel.
        extra["input_output_aliases"] = {0: 0}

    return pl.pallas_call(
        _identity_kernel,
        out_shape=jax.ShapeDtypeStruct((N, W), x2.dtype),
        grid_spec=pltpu.PrefetchScalarGridSpec(
            num_scalar_prefetch=0,
            grid=grid,
            in_specs=[pl.BlockSpec((tr, tc), lambda i: (i, 0))],
            out_specs=pl.BlockSpec((tr, tc), lambda i: (i, 0)),
        ),
        compiler_params=pltpu.CompilerParams(
            dimension_semantics=("parallel",),
            vmem_limit_bytes=vmem_limit_bytes,
        ),
        cost_estimate=pl.CostEstimate(
            flops=0,
            transcendentals=0,
            bytes_accessed=2 * total_bytes,
        ),
        **extra,
    )(x2)


def identity_forward(x, *, donate=False):
    """IdentityModel.forward implemented as a Pallas TPU kernel (bit-exact copy)."""
    orig_shape = x.shape
    dtype = x.dtype
    total = int(x.size)
    if total == 0:
        return x  # nothing to copy

    itemsize = jnp.dtype(dtype).itemsize
    target_block_bytes, vmem_limit_bytes = _chip_tuning()

    mode, W = _plan_view(total, itemsize)
    x_flat = x.reshape(-1)

    if mode == "elem":
        work = x_flat.reshape(-1, W)
    elif mode == "byte":
        # uint8 bit-view regains a 128-divisible lane axis for awkward element counts.
        work = lax.bitcast_convert_type(x_flat, jnp.uint8).reshape(-1, W)
    else:  # "pad": truly awkward totals -> padded slab, slice back afterwards
        pad = (-total) % W
        work = jnp.pad(x_flat, (0, pad)).reshape(-1, W)

    out2 = _copy_2d(
        work,
        target_block_bytes=target_block_bytes,
        vmem_limit_bytes=vmem_limit_bytes,
        donate=donate,
    )

    if mode == "elem":
        return out2.reshape(orig_shape)
    elif mode == "byte":
        out_bytes = out2.reshape(-1)
        if itemsize > 1:
            out_flat = lax.bitcast_convert_type(out_bytes.reshape(total, itemsize), dtype)
        else:
            out_flat = lax.bitcast_convert_type(out_bytes, dtype)
        return out_flat.reshape(orig_shape)
    else:
        return out2.reshape(-1)[:total].reshape(orig_shape)


if __name__ == "__main__":
    key = jax.random.PRNGKey(0)

    # Main path (element view, lane width 1024): matches the module's "any shape" contract.
    x = jax.random.normal(key, (2, 4, 16, 16), dtype=jnp.float32)
    y = identity_forward(x)
    jax.block_until_ready(y)
    assert y.shape == x.shape and y.dtype == x.dtype
    assert bool(jnp.all(y == x))

    # Byte-view fallback path (96 f32 elements -> 384 bytes, lane width 128).
    x2 = jax.random.normal(jax.random.PRNGKey(1), (3, 32), dtype=jnp.float32)
    y2 = identity_forward(x2)
    jax.block_until_ready(y2)
    assert y2.shape == x2.shape and y2.dtype == x2.dtype
    assert bool(jnp.all(y2 == x2))

    # Padded-slab fallback path (105 elements, no 128-divisible view).
    x3 = jax.random.normal(jax.random.PRNGKey(2), (3, 5, 7), dtype=jnp.float32)
    y3 = identity_forward(x3)
    jax.block_until_ready(y3)
    assert y3.shape == x3.shape and y3.dtype == x3.dtype
    assert bool(jnp.all(y3 == x3))

    print("KERNEL_OK")
</pallas_src>

<mosaic_0001>
module attributes {stable_mosaic.version = 11 : i64} {
  func.func @_identity_kernel(%arg0: i32, %arg1: memref<2x1024xf32, #tpu.memory_space<vmem>>, %arg2: memref<2x1024xf32, #tpu.memory_space<vmem>>) attributes {dimension_semantics = [#tpu.dimension_semantics<parallel>], iteration_bounds = array<i64: 1>, scalar_prefetch = 0 : i64, scratch_operands = 0 : i64, tpu.core_type = #tpu.core_type<tc>, window_params = [{transform_indices = @transform_0, window_bounds = array<i64: 2, 1024>}, {transform_indices = @transform_1, window_bounds = array<i64: 2, 1024>}]} {
    %c0 = arith.constant 0 : index
    %c0_0 = arith.constant 0 : index
    %0 = vector.load %arg1[%c0, %c0_0] : memref<2x1024xf32, #tpu.memory_space<vmem>>, vector<2x1024xf32>
    %c0_1 = arith.constant 0 : index
    %c0_2 = arith.constant 0 : index
    %1 = vector.load %arg2[%c0_1, %c0_2] : memref<2x1024xf32, #tpu.memory_space<vmem>>, vector<2x1024xf32>
    tpu.vector_store %arg2[%c0_1, %c0_2], %0 {strides = array<i32>} : memref<2x1024xf32, #tpu.memory_space<vmem>>, vector<2x1024xf32>,
    return
  }
  func.func @transform_0(%arg0: i32) -> (i32, i32) {
    %c0_i32 = arith.constant 0 : i32
    %c0_i32_0 = arith.constant 0 : i32
    return %arg0, %c0_i32 : i32, i32
  }
  func.func @transform_1(%arg0: i32) -> (i32, i32) {
    %c0_i32 = arith.constant 0 : i32
    %c0_i32_0 = arith.constant 0 : i32
    return %arg0, %c0_i32 : i32, i32
  }
}

</mosaic_0001>

<bundles_post_ra>
// kernel: tpu_custom_call.1
= control target key start
LH: loop header
LB: loop body
LE: loop exit
PB: predicated region body
PF: predicated region fallthrough
CT: control target
= control target key end

     0   :  { %6 = vsyncpa [#allocation3], 0  ;;  %s126_s0 = inlined_call_operand.hbm [shape: f32[2,1024], index: 0, kind: input, shape index: {}]   ;;  %s127_s1 = inlined_call_operand.hbm [shape: f32[2,1024], index: 1, kind: output, shape index: {}]  }
   0x1   :  { %7 = vsyncpa [#allocation4], 0  ;;  %s90_s6 = smov [#allocation2]   ;;  %s42_s10 = scalar_lea.hbm %s126_s0, 256 }
   0x2   :  { %s14_s7 = sshll.u32 %s90_s6, 4  ;;  %p43_p0 = scmp.ne.s32.totalorder %s126_s0, %s42_s10  ;;  %s15_s7 = int_to_ptr.vmem [resolvable:$true] %s14_s7 }
   0x3   :  { %p46_p1 = scmp.lt.u32.totalorder %s42_s10, %s126_s0 }
   0x5   :  { %p48_p2 = pnand %p46_p1, %p43_p0 }
   0x7   :  { %51 = shalt.err (!%p48_p2)
}
   0x8   :  { %s52_s15 = scalar_lea.vmem %s15_s7, 256  ;;  %p57_p4 = scmp.lt.s32.totalorder %s15_s7, %s15_s7 }
   0x9   :  { %p53_p3 = scmp.ne.s32.totalorder %s15_s7, %s52_s15  ;;  %p58_p5 = scmp.lt.s32.totalorder %s52_s15, %s52_s15 }
   0xb   :  { %p59_p6 = por %p58_p5, %p57_p4 }
   0xd   :  { %p60_p7 = pnand %p59_p6, %p53_p3 }
   0xf   :  { %63 = shalt.err (!%p60_p7)
}
  0x10   :  { %17 = dma.hbm_to_vmem [thread:$0]  %s126_s0, 256, %s15_s7, [#allocation3]  }
  0x11   :  { %86 = dma.done.wait [#allocation3], 256  }
  0x12   :  { %87 = vsyncadd [#allocation3], 4294967040  ;;  %s91_s18 = smov [#allocation5]   ;;  %v21_v0 = vld [vmem:[#allocation2] sm:$0xff]  ;;  %v22_v1 = vld [vmem:[#allocation2 + $0x8] sm:$0xff] }
  0x13   :  { %s31_s19 = sshll.u32 %s91_s18, 4  ;;  %23 = vst [vmem:[#allocation5] sm:$0xff] %v21_v0  ;;  %24 = vst [vmem:[#allocation5 + $0x8] sm:$0xff] %v22_v1  ;;  %s32_s19 = int_to_ptr.vmem [resolvable:$true] %s31_s19 }
  0x14   :  { %s64_s20 = scalar_lea.vmem %s32_s19, 256  ;;  %p69_p9 = scmp.lt.s32.totalorder %s32_s19, %s32_s19 }
  0x15   :  { %p65_p8 = scmp.ne.s32.totalorder %s32_s19, %s64_s20  ;;  %p70_p10 = scmp.lt.s32.totalorder %s64_s20, %s64_s20 }
  0x17   :  { %p71_p11 = por %p70_p10, %p69_p9 }
  0x19   :  { %p72_p12 = pnand %p71_p11, %p65_p8 }
  0x1b   :  { %75 = shalt.err (!%p72_p12)
}
  0x1c   :  { %s76_s0 = scalar_lea.hbm %s127_s1, 256 }
  0x1d   :  { %p77_p13 = scmp.ne.s32.totalorder %s127_s1, %s76_s0  ;;  %p80_p0 = scmp.lt.u32.totalorder %s76_s0, %s127_s1 }
  0x1f   :  { %p82_p1 = pnand %p80_p0, %p77_p13 }
  0x21   :  { %85 = shalt.err (!%p82_p1)
}
  0x22   :  { %34 = dma.vmem_to_hbm [thread:$0]  %s32_s19, 256, %s127_s1, [#allocation4]  }
  0x23   :  { %88 = dma.done.wait [#allocation4], 256  }
  0x24   :  { %89 = vsyncadd [#allocation4], 4294967040 }
  0x25   :  { %38 = vsyncpa [#allocation3], 1 }
  0x26   :  { %39 = vsyncpa [#allocation4], 1 }

</bundles_post_ra>
